<compile_context>
chip_gen: v7x
topology: tpu7x:2x2x1
jax: 0.10.0
libtpu: 0.0.40
codegen_flags: <defaults>
</compile_context>

<pallas_src>
import functools

import jax
import jax.numpy as jnp
from jax.experimental import pallas as pl
from jax.experimental.pallas import tpu as pltpu


def _round_up(x, m):
    return (x + m - 1) // m * m


def _actor_kernel(amax_ref, obs_ref, w1_ref, b1_ref, w2_ref, b2_ref,
                  wout_ref, bout_ref, noise_ref, out_ref, *, act_dim):
    # In-kernel f32 -> bf16 cast of the streamed obs tile (VPU work hidden under DMA).
    obs = obs_ref[...].astype(jnp.bfloat16)
    # hidden layer 1: Linear + ReLU (bf16 MXU operands, f32 accumulate / epilogue)
    h = jnp.dot(obs, w1_ref[...], preferred_element_type=jnp.float32)
    h = jnp.maximum(h + b1_ref[...], 0.0).astype(jnp.bfloat16)
    # hidden layer 2: Linear + ReLU
    h = jnp.dot(h, w2_ref[...], preferred_element_type=jnp.float32)
    h = jnp.maximum(h + b2_ref[...], 0.0).astype(jnp.bfloat16)
    # fused output head: one (h2, 2*act_dim) matmul producing [mu | log_std]
    y = jnp.dot(h, wout_ref[...], preferred_element_type=jnp.float32) + bout_ref[...]
    mu = y[:, :act_dim]
    log_std = y[:, act_dim:]
    # NOTE: the reference PyTorch module applies no log_std clamp; mirrored exactly.
    u = mu + jnp.exp(log_std) * noise_ref[...]
    out_ref[...] = (jnp.tanh(u) * amax_ref[0]).astype(out_ref.dtype)


def prepare_actor_params(params_f32):
    """Cast the weight matrices to bf16 ONCE (weights are static across calls)."""
    p = dict(params_f32)
    for k in ("w1", "w2", "wout"):
        p[k] = params_f32[k].astype(jnp.bfloat16)
    return p


def mlp_actor_forward(obs, params, noise, action_max, *, block_m=4096, min_grid_steps=1):
    """Full MLPActor forward pass in one batch-tiled Pallas kernel call.

    `params` should come from prepare_actor_params (bf16 weights, f32 biases).
    On v7x with large batches, pass min_grid_steps=2 so both TensorCores get work.
    """
    batch, obs_dim = obs.shape
    act_dim = noise.shape[-1]
    h1 = params["w1"].shape[-1]
    h2 = params["w2"].shape[-1]

    # Batch tile: amortize ~0.35 us/step fixed overhead with big tiles; VMEM footprint
    # is tiny (<3 MiB at tm=8192) so VMEM never binds. tm is a multiple of 8 sublanes
    # and chosen near batch/n_steps so no jnp.pad is needed — the ragged last block is
    # handled by Pallas with masked reads/writes (rows are independent, so stale data
    # in the padded region never contaminates valid output rows).
    n_steps = max(pl.cdiv(batch, block_m), min_grid_steps, 1)
    n_steps = max(min(n_steps, pl.cdiv(batch, 8)), 1)   # never below 8 rows per step
    tm = min(_round_up(pl.cdiv(batch, n_steps), 8), _round_up(batch, 8))
    grid = (pl.cdiv(batch, tm),)

    amax = jnp.full((1,), action_max, jnp.float32)

    # Advisory cost estimate so XLA can overlap this small kernel with surrounding work.
    weight_elems = obs_dim * h1 + h1 * h2 + h2 * 2 * act_dim
    cost = pl.CostEstimate(
        flops=2 * batch * weight_elems,
        transcendentals=2 * batch * act_dim,                        # exp + tanh
        bytes_accessed=batch * (4 * obs_dim + 4 * act_dim + 4 * act_dim)
                       + 2 * weight_elems + 4 * (h1 + h2 + 2 * act_dim),
    )

    def resident(shape):  # full-array block, constant index_map -> stays in VMEM
        return pl.BlockSpec(shape, lambda i: (0, 0),
                            memory_space=pltpu.MemorySpace.VMEM)

    kernel = functools.partial(_actor_kernel, act_dim=act_dim)
    return pl.pallas_call(
        kernel,
        out_shape=jax.ShapeDtypeStruct((batch, act_dim), jnp.float32),
        grid=grid,
        in_specs=[
            pl.BlockSpec(memory_space=pltpu.MemorySpace.SMEM),             # action_max
            pl.BlockSpec((tm, obs_dim), lambda i: (i, 0),
                         memory_space=pltpu.MemorySpace.VMEM),             # obs tile (f32)
            resident((obs_dim, h1)), resident((1, h1)),                    # W1, b1
            resident((h1, h2)), resident((1, h2)),                         # W2, b2
            resident((h2, 2 * act_dim)), resident((1, 2 * act_dim)),       # Wout, bout
            pl.BlockSpec((tm, act_dim), lambda i: (i, 0),
                         memory_space=pltpu.MemorySpace.VMEM),             # noise tile
        ],
        out_specs=pl.BlockSpec((tm, act_dim), lambda i: (i, 0),
                               memory_space=pltpu.MemorySpace.VMEM),
        compiler_params=pltpu.CompilerParams(
            dimension_semantics=("parallel",)),
        cost_estimate=cost,
    )(amax, obs, params["w1"], params["b1"], params["w2"], params["b2"],
      params["wout"], params["bout"], noise)


def _reference_forward(obs, params, noise, action_max):
    """Pure-JAX f32 reference mirroring the PyTorch module."""
    act_dim = noise.shape[-1]
    h = jnp.maximum(obs @ params["w1"] + params["b1"], 0.0)
    h = jnp.maximum(h @ params["w2"] + params["b2"], 0.0)
    y = h @ params["wout"] + params["bout"]
    mu, log_std = y[:, :act_dim], y[:, act_dim:]
    u = mu + jnp.exp(log_std) * noise
    return jnp.tanh(u) * action_max


def _orthogonal(key, out_dim, in_dim, gain):
    """Deterministic equivalent of torch.nn.init.orthogonal_ on a (out, in) matrix."""
    rows, cols = out_dim, in_dim
    flat = jax.random.normal(key, (max(rows, cols), min(rows, cols)), jnp.float32)
    q, r = jnp.linalg.qr(flat)
    q = q * jnp.sign(jnp.diag(r))
    if rows < cols:
        q = q.T
    return (gain * q[:rows, :cols]).astype(jnp.float32)


def make_params(key, obs_dim, hidden_sizes, act_dim):
    """Same parameter set as MLPActor.__init__ (orthogonal init, zero bias), f32."""
    k1, k2, k3 = jax.random.split(key, 3)
    h1, h2 = hidden_sizes
    w1_t = _orthogonal(k1, h1, obs_dim, gain=1.0)        # torch layout (out, in)
    w2_t = _orthogonal(k2, h2, h1, gain=1.0)
    w3_t = _orthogonal(k3, 2 * act_dim, h2, gain=0.01)   # fused [mu | log_std] head
    return {
        "w1": w1_t.T, "b1": jnp.zeros((1, h1), jnp.float32),
        "w2": w2_t.T, "b2": jnp.zeros((1, h2), jnp.float32),
        "wout": w3_t.T, "bout": jnp.zeros((1, 2 * act_dim), jnp.float32),
    }


if __name__ == "__main__":
    # Small shapes consistent with MLPActor(obs_dim, act_dim, hidden_sizes, ...)
    batch, obs_dim, act_dim = 8, 16, 4
    hidden_sizes = [32, 32]
    action_max = 2.0

    root = jax.random.PRNGKey(0)
    k_param, k_obs, k_noise = jax.random.split(root, 3)

    params_f32 = make_params(k_param, obs_dim, hidden_sizes, act_dim)
    params = prepare_actor_params(params_f32)            # bf16 weights, cast once

    obs = jax.random.normal(k_obs, (batch, obs_dim), jnp.float32)
    # stochastic path: u = mu + std * randn_like(mu)  (pass zeros for deterministic=True)
    noise = jax.random.normal(k_noise, (batch, act_dim), jnp.float32)

    a = mlp_actor_forward(obs, params, noise, action_max)
    jax.block_until_ready(a)

    ref = _reference_forward(obs, params_f32, noise, action_max)
    assert a.shape == (batch, act_dim)
    assert bool(jnp.all(jnp.abs(a) <= action_max + 1e-5))
    assert bool(jnp.allclose(a, ref, atol=2e-2, rtol=2e-2)), \
        f"max abs diff {float(jnp.max(jnp.abs(a - ref)))}"
    print("KERNEL_OK")
</pallas_src>

<mosaic_0001>
module attributes {stable_mosaic.version = 11 : i64} {
  func.func @_actor_kernel(%arg0: i32, %arg1: memref<1xf32, #tpu.memory_space<smem>>, %arg2: memref<8x16xf32, #tpu.memory_space<vmem>>, %arg3: memref<16x32xbf16, #tpu.memory_space<vmem>>, %arg4: memref<1x32xf32, #tpu.memory_space<vmem>>, %arg5: memref<32x32xbf16, #tpu.memory_space<vmem>>, %arg6: memref<1x32xf32, #tpu.memory_space<vmem>>, %arg7: memref<32x8xbf16, #tpu.memory_space<vmem>>, %arg8: memref<1x8xf32, #tpu.memory_space<vmem>>, %arg9: memref<8x4xf32, #tpu.memory_space<vmem>>, %arg10: memref<8x4xf32, #tpu.memory_space<vmem>>) attributes {dimension_semantics = [#tpu.dimension_semantics<parallel>], iteration_bounds = array<i64: 1>, scalar_prefetch = 0 : i64, scratch_operands = 0 : i64, tpu.core_type = #tpu.core_type<tc>, window_params = [{transform_indices = @transform_0, window_bounds = array<i64: 1>}, {transform_indices = @transform_1, window_bounds = array<i64: 8, 16>}, {pipeline_mode = #tpu.pipeline_mode<synchronous>, transform_indices = @transform_2, window_bounds = array<i64: 16, 32>}, {pipeline_mode = #tpu.pipeline_mode<synchronous>, transform_indices = @transform_3, window_bounds = array<i64: 1, 32>}, {pipeline_mode = #tpu.pipeline_mode<synchronous>, transform_indices = @transform_4, window_bounds = array<i64: 32, 32>}, {pipeline_mode = #tpu.pipeline_mode<synchronous>, transform_indices = @transform_5, window_bounds = array<i64: 1, 32>}, {pipeline_mode = #tpu.pipeline_mode<synchronous>, transform_indices = @transform_6, window_bounds = array<i64: 32, 8>}, {pipeline_mode = #tpu.pipeline_mode<synchronous>, transform_indices = @transform_7, window_bounds = array<i64: 1, 8>}, {transform_indices = @transform_8, window_bounds = array<i64: 8, 4>}, {transform_indices = @transform_9, window_bounds = array<i64: 8, 4>}]} {
    %c0 = arith.constant 0 : index
    %c0_0 = arith.constant 0 : index
    %0 = vector.load %arg2[%c0, %c0_0] : memref<8x16xf32, #tpu.memory_space<vmem>>, vector<8x16xf32>
    %1 = arith.truncf %0 : vector<8x16xf32> to vector<8x16xbf16>
    %c0_1 = arith.constant 0 : index
    %c0_2 = arith.constant 0 : index
    %2 = vector.load %arg3[%c0_1, %c0_2] : memref<16x32xbf16, #tpu.memory_space<vmem>>, vector<16x32xbf16>
    %cst = arith.constant dense<0.000000e+00> : vector<8x32xf32>
    %3 = tpu.matmul %1, %2, %cst {dimension_numbers = #tpu.dot_dimension_numbers<[1], [0], [0], [1], [0, 0, 1, 1], [], []>} : vector<8x16xbf16>, vector<16x32xbf16>, vector<8x32xf32> -> vector<8x32xf32>
    %c0_3 = arith.constant 0 : index
    %c0_4 = arith.constant 0 : index
    %4 = vector.load %arg4[%c0_3, %c0_4] : memref<1x32xf32, #tpu.memory_space<vmem>>, vector<1x32xf32>
    %5 = vector.broadcast %4 : vector<1x32xf32> to vector<8x32xf32>
    %6 = arith.addf %3, %5 : vector<8x32xf32>
    %cst_5 = arith.constant 0.000000e+00 : f32
    %7 = vector.broadcast %cst_5 : f32 to vector<8x32xf32>
    %8 = arith.maximumf %6, %7 : vector<8x32xf32>
    %9 = arith.truncf %8 : vector<8x32xf32> to vector<8x32xbf16>
    %c0_6 = arith.constant 0 : index
    %c0_7 = arith.constant 0 : index
    %10 = vector.load %arg5[%c0_6, %c0_7] : memref<32x32xbf16, #tpu.memory_space<vmem>>, vector<32x32xbf16>
    %cst_8 = arith.constant dense<0.000000e+00> : vector<8x32xf32>
    %11 = tpu.matmul %9, %10, %cst_8 {dimension_numbers = #tpu.dot_dimension_numbers<[1], [0], [0], [1], [0, 0, 1, 1], [], []>} : vector<8x32xbf16>, vector<32x32xbf16>, vector<8x32xf32> -> vector<8x32xf32>
    %c0_9 = arith.constant 0 : index
    %c0_10 = arith.constant 0 : index
    %12 = vector.load %arg6[%c0_9, %c0_10] : memref<1x32xf32, #tpu.memory_space<vmem>>, vector<1x32xf32>
    %13 = vector.broadcast %12 : vector<1x32xf32> to vector<8x32xf32>
    %14 = arith.addf %11, %13 : vector<8x32xf32>
    %cst_11 = arith.constant 0.000000e+00 : f32
    %15 = vector.broadcast %cst_11 : f32 to vector<8x32xf32>
    %16 = arith.maximumf %14, %15 : vector<8x32xf32>
    %17 = arith.truncf %16 : vector<8x32xf32> to vector<8x32xbf16>
    %c0_12 = arith.constant 0 : index
    %c0_13 = arith.constant 0 : index
    %18 = vector.load %arg7[%c0_12, %c0_13] : memref<32x8xbf16, #tpu.memory_space<vmem>>, vector<32x8xbf16>
    %cst_14 = arith.constant dense<0.000000e+00> : vector<8x8xf32>
    %19 = tpu.matmul %17, %18, %cst_14 {dimension_numbers = #tpu.dot_dimension_numbers<[1], [0], [0], [1], [0, 0, 1, 1], [], []>} : vector<8x32xbf16>, vector<32x8xbf16>, vector<8x8xf32> -> vector<8x8xf32>
    %c0_15 = arith.constant 0 : index
    %c0_16 = arith.constant 0 : index
    %20 = vector.load %arg8[%c0_15, %c0_16] : memref<1x8xf32, #tpu.memory_space<vmem>>, vector<1x8xf32>
    %21 = vector.broadcast %20 : vector<1x8xf32> to vector<8x8xf32>
    %22 = arith.addf %19, %21 : vector<8x8xf32>
    %23 = vector.extract_strided_slice %22 {offsets = [0, 0], sizes = [8, 4], strides = [1, 1]} : vector<8x8xf32> to vector<8x4xf32>
    %24 = vector.extract_strided_slice %22 {offsets = [0, 4], sizes = [8, 4], strides = [1, 1]} : vector<8x8xf32> to vector<8x4xf32>
    %25 = math.exp %24 : vector<8x4xf32>
    %c0_17 = arith.constant 0 : index
    %c0_18 = arith.constant 0 : index
    %26 = vector.load %arg9[%c0_17, %c0_18] : memref<8x4xf32, #tpu.memory_space<vmem>>, vector<8x4xf32>
    %27 = arith.mulf %25, %26 : vector<8x4xf32>
    %28 = arith.addf %23, %27 : vector<8x4xf32>
    %29 = math.tanh %28 : vector<8x4xf32>
    %c0_19 = arith.constant 0 : index
    %30 = memref.load %arg1[%c0_19] : memref<1xf32, #tpu.memory_space<smem>>
    %31 = vector.broadcast %30 : f32 to vector<8x4xf32>
    %32 = arith.mulf %29, %31 : vector<8x4xf32>
    %c0_20 = arith.constant 0 : index
    %c0_21 = arith.constant 0 : index
    %33 = vector.load %arg10[%c0_20, %c0_21] : memref<8x4xf32, #tpu.memory_space<vmem>>, vector<8x4xf32>
    tpu.vector_store %arg10[%c0_20, %c0_21], %32 {strides = array<i32>} : memref<8x4xf32, #tpu.memory_space<vmem>>, vector<8x4xf32>,
    return
  }
  func.func @transform_0(%arg0: i32) -> i32 {
    %c0_i32 = arith.constant 0 : i32
    %c0_i32_0 = arith.constant 0 : i32
    return %c0_i32 : i32
  }
  func.func @transform_1(%arg0: i32) -> (i32, i32) {
    %c0_i32 = arith.constant 0 : i32
    %c0_i32_0 = arith.constant 0 : i32
    return %arg0, %c0_i32 : i32, i32
  }
  func.func @transform_2(%arg0: i32) -> (i32, i32) {
    %c0_i32 = arith.constant 0 : i32
    %c0_i32_0 = arith.constant 0 : i32
    %c0_i32_1 = arith.constant 0 : i32
    return %c0_i32, %c0_i32_0 : i32, i32
  }
  func.func @transform_3(%arg0: i32) -> (i32, i32) {
    %c0_i32 = arith.constant 0 : i32
    %c0_i32_0 = arith.constant 0 : i32
    %c0_i32_1 = arith.constant 0 : i32
    return %c0_i32, %c0_i32_0 : i32, i32
  }
  func.func @transform_4(%arg0: i32) -> (i32, i32) {
    %c0_i32 = arith.constant 0 : i32
    %c0_i32_0 = arith.constant 0 : i32
    %c0_i32_1 = arith.constant 0 : i32
    return %c0_i32, %c0_i32_0 : i32, i32
  }
  func.func @transform_5(%arg0: i32) -> (i32, i32) {
    %c0_i32 = arith.constant 0 : i32
    %c0_i32_0 = arith.constant 0 : i32
    %c0_i32_1 = arith.constant 0 : i32
    return %c0_i32, %c0_i32_0 : i32, i32
  }
  func.func @transform_6(%arg0: i32) -> (i32, i32) {
    %c0_i32 = arith.constant 0 : i32
    %c0_i32_0 = arith.constant 0 : i32
    %c0_i32_1 = arith.constant 0 : i32
    return %c0_i32, %c0_i32_0 : i32, i32
  }
  func.func @transform_7(%arg0: i32) -> (i32, i32) {
    %c0_i32 = arith.constant 0 : i32
    %c0_i32_0 = arith.constant 0 : i32
    %c0_i32_1 = arith.constant 0 : i32
    return %c0_i32, %c0_i32_0 : i32, i32
  }
  func.func @transform_8(%arg0: i32) -> (i32, i32) {
    %c0_i32 = arith.constant 0 : i32
    %c0_i32_0 = arith.constant 0 : i32
    return %arg0, %c0_i32 : i32, i32
  }
  func.func @transform_9(%arg0: i32) -> (i32, i32) {
    %c0_i32 = arith.constant 0 : i32
    %c0_i32_0 = arith.constant 0 : i32
    return %arg0, %c0_i32 : i32, i32
  }
}

</mosaic_0001>

<bundles_post_ra>
// kernel: tpu_custom_call.1
= control target key start
LH: loop header
LB: loop body
LE: loop exit
PB: predicated region body
PF: predicated region fallthrough
CT: control target
= control target key end

     0   :  { %v309_v0 = vmov 0.0   ;;  %vm310_vm0 = vmmov 0   ;;  %vm51_vm1 = vcmask 130048   ;;  %vm120_vm2 = vcmask 261120   ;;  %s401_s2 = inlined_call_operand.vmem [shape: bf16[16,32], index: 2, kind: input, shape index: {}]   ;;  %s402_s1 = inlined_call_operand.vmem [shape: f32[8,16], index: 1, kind: input, shape index: {}]   ;;  %s403_s4 = inlined_call_operand.vmem [shape: bf16[32,32], index: 4, kind: input, shape index: {}]   ;;  %s404_s6 = inlined_call_operand.vmem [shape: bf16[32,8], index: 6, kind: input, shape index: {}]   ;;  %s405_s3 = inlined_call_operand.vmem [shape: f32[1,32], index: 3, kind: input, shape index: {}]   ;;  %s406_s8 = inlined_call_operand.vmem [shape: f32[8,4], index: 8, kind: input, shape index: {}]   ;;  %s407_s5 = inlined_call_operand.vmem [shape: f32[1,32], index: 5, kind: input, shape index: {}]   ;;  %s408_s7 = inlined_call_operand.vmem [shape: f32[1,8], index: 7, kind: input, shape index: {}]   ;;  %s409_s0 = inlined_call_operand.<no memory space> [shape: f32[1], index: 0, kind: input, shape index: {}]   ;;  %s410_s9 = inlined_call_operand.vmem [shape: f32[8,4], index: 9, kind: output, shape index: {}]  }
   0x1   :  { %274 = vmatprep.subr.bf16.mxu0 %v309_v0  ;;  %v300_v1 = vld [vmem:[%s401_s2] sm:$0xff]   ;;  %276 = vmatprep.mubr.msk.bf16.mxu0 %vm310_vm0, %v309_v0  ;;  %v302_v5 = vld [vmem:[%s403_s4 + $0x8] sm:$0xff]   ;;  %v247_v37 = vstv %s409_s0  ;;  %vm249_vm3 = vcmask 31744  }
   0x2   :  { %v34_v2 = vld [vmem:[%s402_s1] sm:$0xff]  ;;  %280 = vmatprep.subr.bf16.mxu1 %v309_v0  ;;  %284 = vmatprep.mubr.msk.bf16.mxu1 %vm310_vm0, %v309_v0  ;;  %v304_v15 = vld [vmem:[%s404_s6 + $0x8] sm:$0xff]  }
   0x3   :  { %275 = vmatpush3.bf16.msra.mxu0 %v300_v1  ;;  %v35_v3 = vpack.c.bf16 %v34_v2, %v34_v2  ;;  %v301_v4 = vld [vmem:[%s403_s4] sm:$0xff]  }
   0x4   :  { %288 = vmatprep.subr.bf16.mxu0 %v309_v0  ;;  %281 = vmatpush3.bf16.msra.mxu1 %v301_v4  ;;  %v303_v6 = vld [vmem:[%s404_s6] sm:$0xff]  }
   0x5   :  { %282 = vmatprep.subr.bf16.mxu1 %v309_v0  ;;  %v255_v7 = vld [vmem:[%s405_s3] ss:$0 sm:$0xff]  ;;  %s311_s3 = smov 4  }
   0x6   :  { %277 = vmatmul.mubr.msk.bf16.vlgmr.msra.gmra.mrb[0].mxu0 %vm51_vm1, %v35_v3  ;;  %v234_v16 = vld [vmem:[%s406_s8] sm:$0xff] }
   0x7   :  { %292 = vmatprep.mubr.msk.bf16.mxu0 %vm310_vm0, %v309_v0  ;;  %289 = vmatpush3.bf16.msra.mxu0 %v303_v6  ;;  %v258_v17 = vld [vmem:[%s407_s5] ss:$0 sm:$0xff]  ;;  %s312_s5 = smov 124  }
   0x8   :  { %283 = vmatpush3.bf16.msra.mxu1 %v302_v5  ;;  %290 = vmatprep.subr.bf16.mxu0 %v309_v0  ;;  %v262_v25 = vld [vmem:[%s408_s7] ss:$0 sm:$0xff] }
   0x9   :  { %236 = vrot.lane.b32.xlu0 %v234_v16, %s311_s3 }
   0xb   :  { %291 = vmatpush3.bf16.msra.mxu0 %v304_v15 }
  0x7b   :  { %v237_v32 = vpop.permute.xlu0 %236 }
  0xd9   :  { %v89_v8 = vpop.f32.mrb[0].mxu0 }
  0xda   :  { %v90_v9 = vadd.f32 %v255_v7, %v89_v8  ;;  %v278_v10 = vpop.f32.mrb[1].mxu0 }
  0xdb   :  { %v92_v11 = vpop.f32.mrb[2].mxu0 }
  0xdc   :  { %v95_v12 = vmax.f32 %v90_v9, 0.0  ;;  %v279_v13 = vpop.f32.mrb[3].mxu0 }
  0xde   :  { %v96_v14 = vpack.c.bf16 %v95_v12, %v95_v12 }
  0xe0   :  { %285 = vmatmul.mubr.msk.bf16.vlgmr.msra.gmra.mrb[0].mxu1 %vm120_vm2, %v96_v14 }
 0x1b3   :  { %v158_v18 = vpop.f32.mrb[0].mxu1 }
 0x1b4   :  { %v159_v19 = vadd.f32 %v258_v17, %v158_v18  ;;  %v286_v20 = vpop.f32.mrb[1].mxu1 }
 0x1b5   :  { %v161_v21 = vpop.f32.mrb[2].mxu1 }
 0x1b6   :  { %v164_v22 = vmax.f32 %v159_v19, 0.0  ;;  %v287_v23 = vpop.f32.mrb[3].mxu1 }
 0x1b8   :  { %v165_v24 = vpack.c.bf16 %v164_v22, %v164_v22 }
 0x1ba   :  { %293 = vmatmul.mubr.msk.bf16.vlgmr.msra.gmra.mrb[4].mxu0 %vm120_vm2, %v165_v24 }
 0x28d   :  { %v226_v26 = vpop.f32.mrb[4].mxu0 }
 0x28e   :  { %v227_v27 = vadd.f32 %v262_v25, %v226_v26  ;;  %v294_v28 = vpop.f32.mrb[5].mxu0 }
 0x28f   :  { %v229_v29 = vpop.f32.mrb[6].mxu0 }
 0x290   :  { %v232_v30 = vmul.f32 1.442695, %v227_v27  ;;  %v295_v31 = vpop.f32.mrb[7].mxu0 }
 0x292   :  { %305 = vpow2.f32 %v232_v30 }
 0x29c   :  { %v306_v33 = vpop.eup %305 }
 0x29d   :  { %v239_v34 = vmul.f32 %v306_v33, %v237_v32 }
 0x29f   :  { %241 = vrot.lane.b32.xlu0 %v239_v34, %s312_s5 }
 0x311   :  { %v242_v35 = vpop.permute.xlu0 %241 }
 0x312   :  { %v244_v36 = vadd.f32 %v242_v35, %v227_v27 }
 0x314   :  { %307 = vtanh.f32 %v244_v36 }
 0x31e   :  { %v308_v38 = vpop.eup %307 }
 0x31f   :  { %v248_v39 = vmul.f32 %v308_v38, %v247_v37 }
 0x321   :  { %250 = vst.msk [vmem:[%s410_s9] sm:$0xff] %vm249_vm3, %v248_v39 }

</bundles_post_ra>
